<compile_context>
chip_gen: v7x
topology: tpu7x:2x2x1
jax: 0.10.0
libtpu: 0.0.40
codegen_flags: <defaults>
</compile_context>

<pallas_src>
import functools

import jax
import jax.numpy as jnp
from jax.experimental import pallas as pl
from jax.experimental.pallas import tpu as pltpu

EPS = 1e-5  # PyTorch LayerNorm default eps


def _round_up(x, m):
    return ((x + m - 1) // m) * m


def _cdiv(a, b):
    return (a + b - 1) // b


def _ln_relu_bf16(h):
    """One-pass LayerNorm over the last dim (f32 stats, no affine) + ReLU -> bf16."""
    mu = jnp.mean(h, axis=-1, keepdims=True)
    msq = jnp.mean(h * h, axis=-1, keepdims=True)
    var = msq - mu * mu                      # keep stats in f32 (cancellation-safe)
    inv = jax.lax.rsqrt(var + EPS)
    return jnp.maximum((h - mu) * inv, 0.0).astype(jnp.bfloat16)


def _dot_f32(a, b):
    """bf16 x bf16 MXU matmul with f32 accumulation."""
    return jnp.dot(a, b, preferred_element_type=jnp.float32)


# -----------------------------------------------------------------------------
# Stage 1: 1x1 convs (channel matmuls) + per-point LN/ReLU + running max over
# points.  grid = (batch tiles [parallel], point tiles [arbitrary]).
# -----------------------------------------------------------------------------
def conv_stage_kernel(x_ref, w1, b1, w2, b2, w3, b3, g_ref, *, tn, n_valid, masked):
    p = pl.program_id(1)
    tb = g_ref.shape[1]
    k = x_ref.shape[-1]

    x = x_ref[...].reshape(tb * tn, k)                       # (rows, k) bf16
    h = _ln_relu_bf16(_dot_f32(x, w1[...]) + b1[...])        # (rows, 64)
    h = _ln_relu_bf16(_dot_f32(h, w2[...]) + b2[...])        # (rows, 128)
    h = _ln_relu_bf16(_dot_f32(h, w3[...]) + b3[...])        # (rows, 1024) bf16

    h3 = h.reshape(tb, tn, h.shape[-1])
    if masked:
        # Zero padded point rows; post-ReLU values are >= 0, so 0 never wins
        # the max over the valid (non-empty) point set.
        pt = p * tn + jax.lax.broadcasted_iota(jnp.int32, (1, tn, 1), 1)
        h3 = jnp.where(pt < n_valid, h3, jnp.zeros_like(h3))

    hm = jnp.max(h3, axis=1)[None]                           # (1, tb, 1024) bf16

    @pl.when(p == 0)
    def _():
        g_ref[...] = hm

    @pl.when(p > 0)
    def _():
        g_ref[...] = jnp.maximum(g_ref[...], hm)


# -----------------------------------------------------------------------------
# Stage 2: fc1/fc2/fc3 with M = batch (fc weights stream through the MXU once).
# -----------------------------------------------------------------------------
def fc_stage_kernel(g_ref, wf1, bf1, wf2, bf2, wf3, bf3, out_ref):
    g = g_ref[...]                                           # (tbf, 1024) bf16
    f = _ln_relu_bf16(_dot_f32(g, wf1[...]) + bf1[...])      # (tbf, 512)
    f = _ln_relu_bf16(_dot_f32(f, wf2[...]) + bf2[...])      # (tbf, 256)
    out_ref[...] = _dot_f32(f, wf3[...]) + bf3[...]          # (tbf, k*k) f32


def init_params(key, k):
    """Deterministic PyTorch-style uniform(-1/sqrt(fan_in), 1/sqrt(fan_in)) init (f32)."""
    dims = [(k, 64), (64, 128), (128, 1024), (1024, 512), (512, 256), (256, k * k)]
    params = []
    for din, dout in dims:
        key, kw, kb = jax.random.split(key, 3)
        bound = 1.0 / float(din) ** 0.5
        w = jax.random.uniform(kw, (din, dout), jnp.float32, -bound, bound)
        b = jax.random.uniform(kb, (1, dout), jnp.float32, -bound, bound)
        params += [w, b]
    return params


def prepare_params(params_f32):
    """Weights -> bf16 (MXU-native, halves weight HBM traffic); biases stay f32."""
    out = []
    for i, p in enumerate(params_f32):
        out.append(p.astype(jnp.bfloat16) if i % 2 == 0 else p.astype(jnp.float32))
    return out


def _tuning():
    """Generation-dependent (row-tile cap, vmem limit)."""
    try:
        kind = jax.devices()[0].device_kind.lower()
    except Exception:
        kind = ""
    if ("v5 lite" in kind or "v5e" in kind or "v5litepod" in kind
            or "v6" in kind or "trillium" in kind):
        return 4096, 96 * 1024 * 1024        # 128 MiB physical VMEM
    # v7x (64 MiB physical VMEM) or unknown: conservative.
    return 2048, 48 * 1024 * 1024


def stn_forward(x_ncl, params, k):
    """x_ncl: (B, k, N) float32 (PyTorch NCL layout). Returns (B, k, k) float32."""
    B, cin, N = x_ncl.shape
    assert cin == k
    kk = k * k
    w1, b1, w2, b2, w3, b3, wf1, bf1, wf2, bf2, wf3, bf3 = params
    conv_params = (w1, b1, w2, b2, w3, b3)
    fc_params = (wf1, bf1, wf2, bf2, wf3, bf3)

    max_rows, vmem_limit = _tuning()

    # ---- point tiling: multiple of 8, minimal padding ----
    n_ptiles = _cdiv(N, max_rows)
    tn = _round_up(_cdiv(N, n_ptiles), 8)
    n_pad = tn * n_ptiles
    masked = n_pad != N

    # ---- batch tiling: keep rows/step <= max_rows; >=2 parallel steps for v7x ----
    tb = max(1, min(B, max_rows // tn))
    if B >= 2:
        tb = min(tb, _cdiv(B, 2))
    b_pad = _round_up(B, tb)
    nb = b_pad // tb

    # Stream the input as bf16 (cast fused with the NCL->NLC transpose).
    x = jnp.transpose(x_ncl, (0, 2, 1)).astype(jnp.bfloat16)      # (B, N, k)
    x = jnp.pad(x, ((0, b_pad - B), (0, n_pad - N), (0, 0)))
    x = x.reshape(nb, tb, n_pad, k)

    conv_in_specs = [pl.BlockSpec((1, tb, tn, k), lambda bi, pi: (bi, 0, pi, 0))]
    for prm in conv_params:
        conv_in_specs.append(
            pl.BlockSpec(prm.shape, lambda bi, pi: (0, 0),
                         pipeline_mode=pl.Buffered(1)))            # constant weights

    g = pl.pallas_call(
        functools.partial(conv_stage_kernel, tn=tn, n_valid=N, masked=masked),
        out_shape=jax.ShapeDtypeStruct((nb, tb, 1024), jnp.bfloat16),
        grid=(nb, n_pad // tn),
        in_specs=conv_in_specs,
        out_specs=pl.BlockSpec((1, tb, 1024), lambda bi, pi: (bi, 0, 0)),
        compiler_params=pltpu.CompilerParams(
            dimension_semantics=("parallel", "arbitrary"),
            vmem_limit_bytes=vmem_limit,
        ),
    )(x, *conv_params)

    # ---- FC stage: M = B_pad in one step (tiled only for very large B) ----
    g2 = g.reshape(b_pad, 1024)
    tbf = 256 if b_pad > 256 else b_pad
    b_fc = _round_up(b_pad, tbf)
    if b_fc != b_pad:
        g2 = jnp.pad(g2, ((0, b_fc - b_pad), (0, 0)))

    fc_in_specs = [pl.BlockSpec((tbf, 1024), lambda i: (i, 0))]
    for prm in fc_params:
        fc_in_specs.append(
            pl.BlockSpec(prm.shape, lambda i: (0, 0),
                         pipeline_mode=pl.Buffered(1)))

    out = pl.pallas_call(
        fc_stage_kernel,
        out_shape=jax.ShapeDtypeStruct((b_fc, kk), jnp.float32),
        grid=(b_fc // tbf,),
        in_specs=fc_in_specs,
        out_specs=pl.BlockSpec((tbf, kk), lambda i: (i, 0)),
        compiler_params=pltpu.CompilerParams(
            dimension_semantics=("parallel",),
            vmem_limit_bytes=vmem_limit,
        ),
    )(g2, *fc_params)

    return out[:B].reshape(B, k, k)


def stn_reference(x_ncl, params, k):
    """Pure-JAX reference mirroring the kernel math (bf16 weights/activations, f32 stats)."""
    w1, b1, w2, b2, w3, b3, wf1, bf1, wf2, bf2, wf3, bf3 = params
    B, _, N = x_ncl.shape
    x = jnp.transpose(x_ncl, (0, 2, 1)).reshape(B * N, k).astype(jnp.bfloat16)
    h = _ln_relu_bf16(_dot_f32(x, w1) + b1)
    h = _ln_relu_bf16(_dot_f32(h, w2) + b2)
    h = _ln_relu_bf16(_dot_f32(h, w3) + b3)
    g = jnp.max(h.reshape(B, N, -1), axis=1)
    f = _ln_relu_bf16(_dot_f32(g, wf1) + bf1)
    f = _ln_relu_bf16(_dot_f32(f, wf2) + bf2)
    o = _dot_f32(f, wf3) + bf3
    return o.reshape(B, k, k)


if __name__ == "__main__":
    K = 64       # STN(k=64) default
    B = 2        # batch
    N = 8        # number of points (seq length)

    key = jax.random.PRNGKey(0)
    kx, kp = jax.random.split(key)
    x = jax.random.normal(kx, (B, K, N), jnp.float32)          # PyTorch NCL layout
    params = prepare_params(init_params(kp, K))

    out = jax.block_until_ready(stn_forward(x, params, K))
    assert out.shape == (B, K, K) and out.dtype == jnp.float32

    ref = jax.block_until_ready(stn_reference(x, params, K))
    if not jnp.allclose(out, ref, rtol=2e-2, atol=2e-2):
        raise AssertionError("Pallas STN output does not match JAX reference")

    print("KERNEL_OK")
</pallas_src>

<mosaic_0001>
module attributes {stable_mosaic.version = 11 : i64} {
  func.func @conv_stage_kernel(%arg0: i32, %arg1: i32, %arg2: memref<1x1x8x64xbf16, #tpu.memory_space<vmem>>, %arg3: memref<64x64xbf16, #tpu.memory_space<vmem>>, %arg4: memref<1x64xf32, #tpu.memory_space<vmem>>, %arg5: memref<64x128xbf16, #tpu.memory_space<vmem>>, %arg6: memref<1x128xf32, #tpu.memory_space<vmem>>, %arg7: memref<128x1024xbf16, #tpu.memory_space<vmem>>, %arg8: memref<1x1024xf32, #tpu.memory_space<vmem>>, %arg9: memref<1x1x1024xbf16, #tpu.memory_space<vmem>>) attributes {dimension_semantics = [#tpu.dimension_semantics<parallel>, #tpu.dimension_semantics<arbitrary>], iteration_bounds = array<i64: 2, 1>, scalar_prefetch = 0 : i64, scratch_operands = 0 : i64, tpu.core_type = #tpu.core_type<tc>, window_params = [{transform_indices = @transform_0, window_bounds = array<i64: 1, 1, 8, 64>}, {pipeline_mode = #tpu.pipeline_mode<synchronous>, transform_indices = @transform_1, window_bounds = array<i64: 64, 64>}, {pipeline_mode = #tpu.pipeline_mode<synchronous>, transform_indices = @transform_2, window_bounds = array<i64: 1, 64>}, {pipeline_mode = #tpu.pipeline_mode<synchronous>, transform_indices = @transform_3, window_bounds = array<i64: 64, 128>}, {pipeline_mode = #tpu.pipeline_mode<synchronous>, transform_indices = @transform_4, window_bounds = array<i64: 1, 128>}, {pipeline_mode = #tpu.pipeline_mode<synchronous>, transform_indices = @transform_5, window_bounds = array<i64: 128, 1024>}, {pipeline_mode = #tpu.pipeline_mode<synchronous>, transform_indices = @transform_6, window_bounds = array<i64: 1, 1024>}, {transform_indices = @transform_7, window_bounds = array<i64: 1, 1, 1024>}]} {
    %c0 = arith.constant 0 : index
    %c0_0 = arith.constant 0 : index
    %c0_1 = arith.constant 0 : index
    %c0_2 = arith.constant 0 : index
    %0 = vector.load %arg2[%c0, %c0_0, %c0_1, %c0_2] : memref<1x1x8x64xbf16, #tpu.memory_space<vmem>>, vector<1x1x8x64xbf16>
    %1 = vector.shape_cast %0 : vector<1x1x8x64xbf16> to vector<8x64xbf16>
    %c0_3 = arith.constant 0 : index
    %c0_4 = arith.constant 0 : index
    %2 = vector.load %arg3[%c0_3, %c0_4] : memref<64x64xbf16, #tpu.memory_space<vmem>>, vector<64x64xbf16>
    %cst = arith.constant dense<0.000000e+00> : vector<8x64xf32>
    %3 = tpu.matmul %1, %2, %cst {dimension_numbers = #tpu.dot_dimension_numbers<[1], [0], [0], [1], [0, 0, 1, 1], [], []>} : vector<8x64xbf16>, vector<64x64xbf16>, vector<8x64xf32> -> vector<8x64xf32>
    %c0_5 = arith.constant 0 : index
    %c0_6 = arith.constant 0 : index
    %4 = vector.load %arg4[%c0_5, %c0_6] : memref<1x64xf32, #tpu.memory_space<vmem>>, vector<1x64xf32>
    %5 = vector.broadcast %4 : vector<1x64xf32> to vector<8x64xf32>
    %6 = arith.addf %3, %5 : vector<8x64xf32>
    %cst_7 = arith.constant dense<0.000000e+00> : vector<8xf32>
    %7 = vector.multi_reduction <add>, %6, %cst_7 [1] : vector<8x64xf32> to vector<8xf32>
    %8 = vector.shape_cast %7 : vector<8xf32> to vector<8x1xf32>
    %cst_8 = arith.constant 6.400000e+01 : f32
    %9 = vector.broadcast %cst_8 : f32 to vector<8x1xf32>
    %10 = arith.divf %8, %9 : vector<8x1xf32>
    %11 = arith.mulf %6, %6 : vector<8x64xf32>
    %cst_9 = arith.constant dense<0.000000e+00> : vector<8xf32>
    %12 = vector.multi_reduction <add>, %11, %cst_9 [1] : vector<8x64xf32> to vector<8xf32>
    %13 = vector.shape_cast %12 : vector<8xf32> to vector<8x1xf32>
    %cst_10 = arith.constant 6.400000e+01 : f32
    %14 = vector.broadcast %cst_10 : f32 to vector<8x1xf32>
    %15 = arith.divf %13, %14 : vector<8x1xf32>
    %16 = arith.mulf %10, %10 : vector<8x1xf32>
    %17 = arith.subf %15, %16 : vector<8x1xf32>
    %cst_11 = arith.constant 9.99999974E-6 : f32
    %18 = vector.broadcast %cst_11 : f32 to vector<8x1xf32>
    %19 = arith.addf %17, %18 : vector<8x1xf32>
    %20 = math.rsqrt %19 : vector<8x1xf32>
    %21 = vector.broadcast %10 : vector<8x1xf32> to vector<8x64xf32>
    %22 = arith.subf %6, %21 : vector<8x64xf32>
    %23 = vector.broadcast %20 : vector<8x1xf32> to vector<8x64xf32>
    %24 = arith.mulf %22, %23 : vector<8x64xf32>
    %cst_12 = arith.constant 0.000000e+00 : f32
    %25 = vector.broadcast %cst_12 : f32 to vector<8x64xf32>
    %26 = arith.maximumf %24, %25 : vector<8x64xf32>
    %27 = arith.truncf %26 : vector<8x64xf32> to vector<8x64xbf16>
    %c0_13 = arith.constant 0 : index
    %c0_14 = arith.constant 0 : index
    %28 = vector.load %arg5[%c0_13, %c0_14] : memref<64x128xbf16, #tpu.memory_space<vmem>>, vector<64x128xbf16>
    %cst_15 = arith.constant dense<0.000000e+00> : vector<8x128xf32>
    %29 = tpu.matmul %27, %28, %cst_15 {dimension_numbers = #tpu.dot_dimension_numbers<[1], [0], [0], [1], [0, 0, 1, 1], [], []>} : vector<8x64xbf16>, vector<64x128xbf16>, vector<8x128xf32> -> vector<8x128xf32>
    %c0_16 = arith.constant 0 : index
    %c0_17 = arith.constant 0 : index
    %30 = vector.load %arg6[%c0_16, %c0_17] : memref<1x128xf32, #tpu.memory_space<vmem>>, vector<1x128xf32>
    %31 = vector.broadcast %30 : vector<1x128xf32> to vector<8x128xf32>
    %32 = arith.addf %29, %31 : vector<8x128xf32>
    %cst_18 = arith.constant dense<0.000000e+00> : vector<8xf32>
    %33 = vector.multi_reduction <add>, %32, %cst_18 [1] : vector<8x128xf32> to vector<8xf32>
    %34 = vector.shape_cast %33 : vector<8xf32> to vector<8x1xf32>
    %cst_19 = arith.constant 1.280000e+02 : f32
    %35 = vector.broadcast %cst_19 : f32 to vector<8x1xf32>
    %36 = arith.divf %34, %35 : vector<8x1xf32>
    %37 = arith.mulf %32, %32 : vector<8x128xf32>
    %cst_20 = arith.constant dense<0.000000e+00> : vector<8xf32>
    %38 = vector.multi_reduction <add>, %37, %cst_20 [1] : vector<8x128xf32> to vector<8xf32>
    %39 = vector.shape_cast %38 : vector<8xf32> to vector<8x1xf32>
    %cst_21 = arith.constant 1.280000e+02 : f32
    %40 = vector.broadcast %cst_21 : f32 to vector<8x1xf32>
    %41 = arith.divf %39, %40 : vector<8x1xf32>
    %42 = arith.mulf %36, %36 : vector<8x1xf32>
    %43 = arith.subf %41, %42 : vector<8x1xf32>
    %cst_22 = arith.constant 9.99999974E-6 : f32
    %44 = vector.broadcast %cst_22 : f32 to vector<8x1xf32>
    %45 = arith.addf %43, %44 : vector<8x1xf32>
    %46 = math.rsqrt %45 : vector<8x1xf32>
    %47 = vector.broadcast %36 : vector<8x1xf32> to vector<8x128xf32>
    %48 = arith.subf %32, %47 : vector<8x128xf32>
    %49 = vector.broadcast %46 : vector<8x1xf32> to vector<8x128xf32>
    %50 = arith.mulf %48, %49 : vector<8x128xf32>
    %cst_23 = arith.constant 0.000000e+00 : f32
    %51 = vector.broadcast %cst_23 : f32 to vector<8x128xf32>
    %52 = arith.maximumf %50, %51 : vector<8x128xf32>
    %53 = arith.truncf %52 : vector<8x128xf32> to vector<8x128xbf16>
    %c0_24 = arith.constant 0 : index
    %c0_25 = arith.constant 0 : index
    %54 = vector.load %arg7[%c0_24, %c0_25] : memref<128x1024xbf16, #tpu.memory_space<vmem>>, vector<128x1024xbf16>
    %cst_26 = arith.constant dense<0.000000e+00> : vector<8x1024xf32>
    %55 = tpu.matmul %53, %54, %cst_26 {dimension_numbers = #tpu.dot_dimension_numbers<[1], [0], [0], [1], [0, 0, 1, 1], [], []>} : vector<8x128xbf16>, vector<128x1024xbf16>, vector<8x1024xf32> -> vector<8x1024xf32>
    %c0_27 = arith.constant 0 : index
    %c0_28 = arith.constant 0 : index
    %56 = vector.load %arg8[%c0_27, %c0_28] : memref<1x1024xf32, #tpu.memory_space<vmem>>, vector<1x1024xf32>
    %57 = vector.broadcast %56 : vector<1x1024xf32> to vector<8x1024xf32>
    %58 = arith.addf %55, %57 : vector<8x1024xf32>
    %cst_29 = arith.constant dense<0.000000e+00> : vector<8xf32>
    %59 = vector.multi_reduction <add>, %58, %cst_29 [1] : vector<8x1024xf32> to vector<8xf32>
    %60 = vector.shape_cast %59 : vector<8xf32> to vector<8x1xf32>
    %cst_30 = arith.constant 1.024000e+03 : f32
    %61 = vector.broadcast %cst_30 : f32 to vector<8x1xf32>
    %62 = arith.divf %60, %61 : vector<8x1xf32>
    %63 = arith.mulf %58, %58 : vector<8x1024xf32>
    %cst_31 = arith.constant dense<0.000000e+00> : vector<8xf32>
    %64 = vector.multi_reduction <add>, %63, %cst_31 [1] : vector<8x1024xf32> to vector<8xf32>
    %65 = vector.shape_cast %64 : vector<8xf32> to vector<8x1xf32>
    %cst_32 = arith.constant 1.024000e+03 : f32
    %66 = vector.broadcast %cst_32 : f32 to vector<8x1xf32>
    %67 = arith.divf %65, %66 : vector<8x1xf32>
    %68 = arith.mulf %62, %62 : vector<8x1xf32>
    %69 = arith.subf %67, %68 : vector<8x1xf32>
    %cst_33 = arith.constant 9.99999974E-6 : f32
    %70 = vector.broadcast %cst_33 : f32 to vector<8x1xf32>
    %71 = arith.addf %69, %70 : vector<8x1xf32>
    %72 = math.rsqrt %71 : vector<8x1xf32>
    %73 = vector.broadcast %62 : vector<8x1xf32> to vector<8x1024xf32>
    %74 = arith.subf %58, %73 : vector<8x1024xf32>
    %75 = vector.broadcast %72 : vector<8x1xf32> to vector<8x1024xf32>
    %76 = arith.mulf %74, %75 : vector<8x1024xf32>
    %cst_34 = arith.constant 0.000000e+00 : f32
    %77 = vector.broadcast %cst_34 : f32 to vector<8x1024xf32>
    %78 = arith.maximumf %76, %77 : vector<8x1024xf32>
    %79 = arith.truncf %78 : vector<8x1024xf32> to vector<8x1024xbf16>
    %80 = vector.shape_cast %79 : vector<8x1024xbf16> to vector<1x8x1024xbf16>
    %cst_35 = arith.constant dense<0xFF80> : vector<1x1024xbf16>
    %81 = vector.multi_reduction <maximumf>, %80, %cst_35 [1] : vector<1x8x1024xbf16> to vector<1x1024xbf16>
    %82 = vector.shape_cast %81 : vector<1x1024xbf16> to vector<1x1x1024xbf16>
    %c0_i32 = arith.constant 0 : i32
    %83 = arith.cmpi eq, %arg1, %c0_i32 : i32
    %84 = arith.extui %83 : i1 to i32
    %c0_i32_36 = arith.constant 0 : i32
    %85 = arith.cmpi ne, %84, %c0_i32_36 : i32
    scf.if %85 {
      %c0_39 = arith.constant 0 : index
      %c0_40 = arith.constant 0 : index
      %c0_41 = arith.constant 0 : index
      %89 = vector.load %arg9[%c0_39, %c0_40, %c0_41] : memref<1x1x1024xbf16, #tpu.memory_space<vmem>>, vector<1x1x1024xbf16>
      tpu.vector_store %arg9[%c0_39, %c0_40, %c0_41], %82 {strides = array<i32>} : memref<1x1x1024xbf16, #tpu.memory_space<vmem>>, vector<1x1x1024xbf16>,
    } else {
    }
    %c0_i32_37 = arith.constant 0 : i32
    %86 = arith.cmpi sgt, %arg1, %c0_i32_37 : i32
    %87 = arith.extui %86 : i1 to i32
    %c0_i32_38 = arith.constant 0 : i32
    %88 = arith.cmpi ne, %87, %c0_i32_38 : i32
    scf.if %88 {
      %c0_39 = arith.constant 0 : index
      %c0_40 = arith.constant 0 : index
      %c0_41 = arith.constant 0 : index
      %89 = vector.load %arg9[%c0_39, %c0_40, %c0_41] : memref<1x1x1024xbf16, #tpu.memory_space<vmem>>, vector<1x1x1024xbf16>
      %90 = arith.maximumf %89, %82 : vector<1x1x1024xbf16>
      %c0_42 = arith.constant 0 : index
      %c0_43 = arith.constant 0 : index
      %c0_44 = arith.constant 0 : index
      %91 = vector.load %arg9[%c0_42, %c0_43, %c0_44] : memref<1x1x1024xbf16, #tpu.memory_space<vmem>>, vector<1x1x1024xbf16>
      tpu.vector_store %arg9[%c0_42, %c0_43, %c0_44], %90 {strides = array<i32>} : memref<1x1x1024xbf16, #tpu.memory_space<vmem>>, vector<1x1x1024xbf16>,
    } else {
    }
    return
  }
  func.func @transform_0(%arg0: i32, %arg1: i32) -> (i32, i32, i32, i32) {
    %c0_i32 = arith.constant 0 : i32
    %c0_i32_0 = arith.constant 0 : i32
    %c0_i32_1 = arith.constant 0 : i32
    return %arg0, %c0_i32, %arg1, %c0_i32_0 : i32, i32, i32, i32
  }
  func.func @transform_1(%arg0: i32, %arg1: i32) -> (i32, i32) {
    %c0_i32 = arith.constant 0 : i32
    %c0_i32_0 = arith.constant 0 : i32
    %c0_i32_1 = arith.constant 0 : i32
    return %c0_i32, %c0_i32_0 : i32, i32
  }
  func.func @transform_2(%arg0: i32, %arg1: i32) -> (i32, i32) {
    %c0_i32 = arith.constant 0 : i32
    %c0_i32_0 = arith.constant 0 : i32
    %c0_i32_1 = arith.constant 0 : i32
    return %c0_i32, %c0_i32_0 : i32, i32
  }
  func.func @transform_3(%arg0: i32, %arg1: i32) -> (i32, i32) {
    %c0_i32 = arith.constant 0 : i32
    %c0_i32_0 = arith.constant 0 : i32
    %c0_i32_1 = arith.constant 0 : i32
    return %c0_i32, %c0_i32_0 : i32, i32
  }
  func.func @transform_4(%arg0: i32, %arg1: i32) -> (i32, i32) {
    %c0_i32 = arith.constant 0 : i32
    %c0_i32_0 = arith.constant 0 : i32
    %c0_i32_1 = arith.constant 0 : i32
    return %c0_i32, %c0_i32_0 : i32, i32
  }
  func.func @transform_5(%arg0: i32, %arg1: i32) -> (i32, i32) {
    %c0_i32 = arith.constant 0 : i32
    %c0_i32_0 = arith.constant 0 : i32
    %c0_i32_1 = arith.constant 0 : i32
    return %c0_i32, %c0_i32_0 : i32, i32
  }
  func.func @transform_6(%arg0: i32, %arg1: i32) -> (i32, i32) {
    %c0_i32 = arith.constant 0 : i32
    %c0_i32_0 = arith.constant 0 : i32
    %c0_i32_1 = arith.constant 0 : i32
    return %c0_i32, %c0_i32_0 : i32, i32
  }
  func.func @transform_7(%arg0: i32, %arg1: i32) -> (i32, i32, i32) {
    %c0_i32 = arith.constant 0 : i32
    %c0_i32_0 = arith.constant 0 : i32
    %c0_i32_1 = arith.constant 0 : i32
    return %arg0, %c0_i32, %c0_i32_0 : i32, i32, i32
  }
}

</mosaic_0001>

<bundles_post_ra>
// kernel: tpu_custom_call.1
= control target key start
LH: loop header
LB: loop body
LE: loop exit
PB: predicated region body
PF: predicated region fallthrough
CT: control target
= control target key end

     0   :  { %s2411_s0 = inlined_call_operand.hbm [shape: bf16[2,1,8,64], index: 0, kind: input, shape index: {}]   ;;  %s2412_s1 = inlined_call_operand.hbm [shape: bf16[64,64], index: 1, kind: input, shape index: {}]   ;;  %s2413_s2 = inlined_call_operand.vmem [shape: f32[1,64], index: 2, kind: input, shape index: {}]   ;;  %s2414_s3 = inlined_call_operand.hbm [shape: bf16[64,128], index: 3, kind: input, shape index: {}]   ;;  %s2415_s4 = inlined_call_operand.vmem [shape: f32[1,128], index: 4, kind: input, shape index: {}]   ;;  %s2416_s5 = inlined_call_operand.hbm [shape: bf16[128,1024], index: 5, kind: input, shape index: {}]   ;;  %s2417_s6 = inlined_call_operand.vmem [shape: f32[1,1024], index: 6, kind: input, shape index: {}]   ;;  %s2418_s7 = inlined_call_operand.vmem [shape: bf16[2,1,1024], index: 7, kind: output, shape index: {}]  }
   0x1   :  { %2423 = sst [smem:[#allocation12_spill]] %s2418_s7 }
   0x2   :  { %12 = vsyncpa [#allocation3], 0 }
   0x3   :  { %14 = vsyncpa [#allocation3 + $0x1], 0 }
   0x4   :  { %15 = vsyncpa [#allocation5], 0 }
   0x5   :  { %16 = vsyncpa [#allocation8], 0  ;;  %s2073_s24 = smov 0   ;;  %s2075_s25 = smov 0  }
   0x6   :  { %s2077_s26 = smov 0   ;;  %s2079_s27 = smov 0  }
   0x7   :  { %s2081_s28 = smov 0   ;;  %s2083_s29 = smov 0  }
   0x8 LB: > { %s1612_s30 = sadd.s32 4294967295, %s2019_s29   ;;  %p56_p0 = scmp.ne.s32.totalorder %s2003_s25, %s1999_s24  ;;  %s2019_s29 = sphi %s2083_s29, %s22_s29   ;;  %s2015_s28 = sphi %s2081_s28, %s2450_s28   ;;  %s2011_s27 = sphi %s2079_s27, %s2449_s27   ;;  %s2007_s26 = sphi %s2077_s26, %s2448_s26   ;;  %s2003_s25 = sphi %s2075_s25, %s2447_s25   ;;  %s1999_s24 = sphi %s2073_s24, %s2446_s24  }
   0x9   : > { %p2103_p1 = scmp.eq.s32.totalorder %s1612_s30, 0  ;;  %p1614_p2 = scmp.ge.s32.totalorder %s2019_s29, 1 }
   0xa   : > { %p219_p3 = scmp.lt.s32.totalorder %s2019_s29, 3  ;;  %s2021_s11 = smov [#allocation4]  }
   0xb   : > { %s2424_s8 = scalar_select %p2103_p1, 1, 0 }
   0xc   : > { %p2111_p4 = por %p2103_p1, %p56_p0  ;;  %p2115_p5 = pnand %p1614_p2, %p219_p3 }
   0xd   : > { %s231_s12 = sshll.u32 %s2021_s11, 4  ;;  %s2022_s14 = smov [#allocation6]   ;;  %s2119_s12 = int_to_ptr.vmem [resolvable:$true] %s231_s12 }
   0xe   : > { %s2425_s9 = scalar_select %p2111_p4, 1, 0 }
   0xf   : > { %s2426_s10 = scalar_select %p2115_p5, 1, 0 }
  0x10   : > { %p1753_p6 = pneg %p2115_p5  ;;  %s247_s15 = sshll.u32 %s2022_s14, 4  ;;  %s2129_s15 = int_to_ptr.vmem [resolvable:$true] %s247_s15 }
  0x11   : > { %s2023_s16 = smov [#allocation7]   ;;  %s1847_s20 = scalar_lea.hbm %s2412_s1, 512 }
  0x12   : > { %p2125_p7 = pnand %p1753_p6, %p2103_p1  ;;  %s2131_s17 = sshll.u32 %s2023_s16, 4  ;;  %s264_s17 = int_to_ptr.vmem [resolvable:$true] %s2131_s17 }
  0x13   : > { %p1848_p8 = scmp.ne.s32.totalorder %s2412_s1, %s1847_s20  ;;  %p1854_p12 = scmp.lt.u32.totalorder %s1847_s20, %s2412_s1 }
  0x14   : > { %p2141_p9 = pneg %p2125_p7 }
  0x16   : > { %p1850_p10 = pnand %p2141_p9, %p1848_p8 }
  0x18   : > { %p1851_p11 = pneg %p1850_p10 }
  0x1a   : > { %p1856_p13 = pnand %p1854_p12, %p1851_p11 }
  0x1c   : > { %1859 = shalt.err (!%p1856_p13)
}
  0x1d   : > { %s1860_s11 = scalar_lea.vmem %s2119_s12, 512  ;;  %p1868_p6 = scmp.lt.s32.totalorder %s2119_s12, %s2119_s12 }
  0x1e   : > { %p1861_p0 = scmp.ne.s32.totalorder %s2119_s12, %s1860_s11  ;;  %p1869_p1 = scmp.lt.s32.totalorder %s1860_s11, %s1860_s11 }
  0x20   : > { %p1863_p2 = pnand %p1861_p0, %p2141_p9  ;;  %p1870_p8 = por %p1869_p1, %p1868_p6 }
  0x22   : > { %p1864_p3 = pneg %p1863_p2 }
  0x24   : > { %p1871_p10 = pnand %p1870_p8, %p1864_p3 }
  0x26   : > { %1874 = shalt.err (!%p1871_p10)
}
  0x27   : > { %s2024_s14 = smov 64   ;;  %s2025_s16 = smov 4  }
  0x28   : > { %1756 = dma.hbm_to_vmem [thread:$0]  (!%p2125_p7), %s2412_s1, 512, %s2119_s12, [#allocation5], %s2024_s14, %s2024_s14, %s2025_s16  }
  0x29   : > { %s1875_s22 = scalar_lea.hbm %s2414_s3, 512 }
  0x2a   : > { %p1876_p1 = scmp.ne.s32.totalorder %s2414_s3, %s1875_s22  ;;  %p1882_p13 = scmp.lt.u32.totalorder %s1875_s22, %s2414_s3 }
  0x2c   : > { %p1878_p11 = pnand %p1876_p1, %p2141_p9 }
  0x2e   : > { %p1879_p12 = pneg %p1878_p11 }
  0x30   : > { %p1884_p0 = pnand %p1882_p13, %p1879_p12 }
  0x32   : > { %1887 = shalt.err (!%p1884_p0)
}
  0x33   : > { %s1888_s12 = scalar_lea.vmem %s2129_s15, 512  ;;  %p1896_p8 = scmp.lt.s32.totalorder %s2129_s15, %s2129_s15 }
  0x34   : > { %p1889_p2 = scmp.ne.s32.totalorder %s2129_s15, %s1888_s12  ;;  %p1897_p10 = scmp.lt.s32.totalorder %s1888_s12, %s1888_s12 }
  0x36   : > { %p1891_p3 = pnand %p1889_p2, %p2141_p9  ;;  %p1898_p1 = por %p1897_p10, %p1896_p8 }
  0x38   : > { %p1892_p6 = pneg %p1891_p3 }
  0x3a   : > { %p1899_p11 = pnand %p1898_p1, %p1892_p6 }
  0x3c   : > { %1902 = shalt.err (!%p1899_p11)
}
  0x3d   : > { %1759 = dma.hbm_to_vmem [thread:$0]  (!%p2125_p7), %s2414_s3, 512, %s2129_s15, [#allocation5], %s2024_s14, %s2024_s14, %s2025_s16  }
  0x3e   : > { %s1903_s21 = scalar_lea.hbm %s2416_s5, 8192 }
  0x3f   : > { %p1904_p12 = scmp.ne.s32.totalorder %s2416_s5, %s1903_s21  ;;  %p1910_p2 = scmp.lt.u32.totalorder %s1903_s21, %s2416_s5 }
  0x41   : > { %p1906_p13 = pnand %p1904_p12, %p2141_p9 }
  0x43   : > { %p1907_p0 = pneg %p1906_p13 }
  0x45   : > { %p1912_p3 = pnand %p1910_p2, %p1907_p0 }
  0x47   : > { %1915 = shalt.err (!%p1912_p3)
}
  0x48   : > { %s1916_s12 = scalar_lea.vmem %s264_s17, 8192  ;;  %p1924_p1 = scmp.lt.s32.totalorder %s264_s17, %s264_s17 }
  0x49   : > { %p1917_p6 = scmp.ne.s32.totalorder %s264_s17, %s1916_s12  ;;  %p1925_p11 = scmp.lt.s32.totalorder %s1916_s12, %s1916_s12 }
  0x4b   : > { %p1919_p8 = pnand %p1917_p6, %p2141_p9  ;;  %p1926_p4 = por %p1925_p11, %p1924_p1 }
  0x4d   : > { %p1920_p10 = pneg %p1919_p8 }
  0x4f   : > { %p1927_p5 = pnand %p1926_p4, %p1920_p10 }
  0x51   : > { %1930 = shalt.err (!%p1927_p5)
}
  0x52   : > { %s2026_s15 = smov 512   ;;  %s2027_s14 = smov 32  }
  0x53   : > { %1762 = dma.hbm_to_vmem [thread:$0]  (!%p2125_p7), %s2416_s5, 8192, %s264_s17, [#allocation8], %s2026_s15, %s2026_s15, %s2027_s14  }
  0x54   : > { %s34_s7 = sadd.s32 1, %s2015_s28  ;;  %p50_p4 = scmp.ne.s32.totalorder %s2007_s26, %s2003_s25 }
  0x55   : > { %p36_p5 = scmp.ge.s32.totalorder %s34_s7, 2  ;;  %p51_p9 = scmp.eq.s32.totalorder %s2019_s29, 0 }
  0x56   : > { %s43_s18 = sadd.s32 1, %s2007_s26  ;;  %s280_s19 = sand.u32 1, %s2007_s26  }
  0x57   : > { %s2452_s7 = smov (%p36_p5, %s34_s7), 0  ;;  %p52_p12 = por %p51_p9, %p50_p4 }
  0x58   : > { %p1770_p13 = scmp.lt.s32.totalorder %s2019_s29, 2  ;;  %s38_s20 = ssub.s32 %s2015_s28, %s2452_s7 }
  0x59   : > { %s1619_s21 = sshll.u32 %s280_s19, 2  ;;  %p41_p0 = scmp.eq.s32.totalorder %s38_s20, 0 }
  0x5a   : > { %s1620_s13 = sshll.u32 %s2015_s28, 6  ;;  %s284_s22 = scalar_lea.vmem [#allocation2], %s1619_s21 }
  0x5b   : > { %s292_s24 = sshll.u32 %s284_s22, 4  ;;  %s2222_s12 = scalar_lea.hbm %s2411_s0, %s1620_s13  ;;  %s2224_s24 = int_to_ptr.vmem [resolvable:$true] %s292_s24 }
  0x5c   : > { %s2217_s30 = scalar_select %p41_p0, %s2007_s26, %s43_s18  }
  0x5d   : > { %p2226_p7 = pnand %p1770_p13, %p52_p12  ;;  %s281_s14 = scalar_lea.sflag [#allocation3], %s280_s19 }
  0x5e   : > { %s1931_s23 = scalar_lea.hbm %s2222_s12, 64  ;;  %s1936_s20 = scalar_lea.hbm %s2411_s0, 128 }
  0x5f   : > { %p1932_p2 = scmp.ne.s32.totalorder %s2222_s12, %s1931_s23  ;;  %p1933_p3 = pneg %p2226_p7 }
  0x60   : > { %p1937_p10 = scmp.lt.u32.totalorder %s2222_s12, %s2411_s0  ;;  %p1938_p1 = scmp.lt.u32.totalorder %s1936_s20, %s1931_s23 }
  0x61   : > { %p1934_p6 = pnand %p1933_p3, %p1932_p2  ;;  %p1940_p4 = scmp.lt.u32.totalorder %s1931_s23, %s2222_s12 }
  0x62   : > { %p1939_p11 = por %p1938_p1, %p1937_p10 }
  0x63   : > { %p1935_p8 = pneg %p1934_p6 }
  0x64   : > { %p1941_p5 = por %p1940_p4, %p1939_p11 }
  0x66   : > { %p1942_p9 = pnand %p1941_p5, %p1935_p8 }
  0x68   : > { %1945 = shalt.err (!%p1942_p9)
}
  0x69   : > { %s1946_s19 = scalar_lea.vmem %s2224_s24, 64  ;;  %s2028_s22 = smov [#allocation2]  }
  0x6a   : > { %p1947_p12 = scmp.ne.s32.totalorder %s2224_s24, %s1946_s19  ;;  %s1951_s17 = sshll.u32 %s2028_s22, 4  ;;  %s1952_s17 = int_to_ptr.vmem [resolvable:$false] %s1951_s17 }
  0x6b   : > { %s1953_s11 = scalar_lea.vmem %s1952_s17, 128  ;;  %p1954_p2 = scmp.lt.s32.totalorder %s2224_s24, %s1952_s17 }
  0x6c   : > { %p1949_p13 = pnand %p1947_p12, %p1933_p3  ;;  %p1955_p6 = scmp.lt.s32.totalorder %s1953_s11, %s1946_s19 }
  0x6e   : > { %p1950_p0 = pneg %p1949_p13  ;;  %p1956_p10 = por %p1955_p6, %p1954_p2 }
  0x70   : > { %p1957_p1 = pnand %p1956_p10, %p1950_p0 }
  0x72   : > { %1960 = shalt.err (!%p1957_p1)
}
  0x73   : > { %1766 = dma.hbm_to_vmem [thread:$0]  (!%p2226_p7), %s2222_s12, 64, %s2224_s24, %s281_s14  }
  0x74   : > { %p2430_p8 = scmp.ne.s32.totalorder %s2426_s10, 0 }
  0x75   : > { %s303_s23 = sand.u32 (!%p2430_p8), 1, %s2003_s25   ;;  %p2431_p3 = scmp.ne.s32.totalorder (!%p2430_p8), %s2425_s9, 0 }
  0x76   : > { %301 = sbr.rel (%p2430_p8) target bundleno = 1380 (0x564), region = 48  ;;  %s1622_s16 = sshll.u32 (!%p2430_p8), %s303_s23, 2 }
  0x77   : > { %s304_s18 = scalar_lea.sflag (!%p2430_p8), [#allocation3], %s303_s23  ;;  %s307_s20 = scalar_lea.vmem (!%p2430_p8), [#allocation2], %s1622_s16 }
  0x7d   : > { %1986 = dma.done.wait (%p2431_p3), %s304_s18, 64  }
  0x7e   : > { %1988 = vsyncadd (%p2431_p3), %s304_s18, 4294967232  ;;  %p2432_p11 = scmp.ne.s32.totalorder %s2424_s8, 0 }
  0x80   : > { %1990 = dma.done.wait (%p2432_p11), [#allocation5], 1024  }
  0x81   : > { %1992 = vsyncadd (%p2432_p11), [#allocation5], 4294966272 }
  0x82   : > { %1994 = dma.done.wait (%p2432_p11), [#allocation8], 8192  }
  0x83   : > { %1996 = vsyncadd (%p2432_p11), [#allocation8], 4294959104  ;;  %v2029_v0 = vmov 0.0   ;;  %vm2030_vm0 = vmmov 0   ;;  %v1833_v1 = vld [vmem:[#allocation4] sm:$0xff]   ;;  %v1834_v2 = vld [vmem:[#allocation4 + $0x8] sm:$0xff]  }
  0x84   : > { %1715 = vmatprep.subr.bf16.mxu0 %v2029_v0  ;;  %1723 = vmatprep.mubr.msk.bf16.mxu0 %vm2030_vm0, %v2029_v0  ;;  %v1835_v3 = vld [vmem:[#allocation4 + $0x10] sm:$0xff]   ;;  %v1836_v4 = vld [vmem:[#allocation4 + $0x18] sm:$0xff]   ;;  %vm395_vm1 = vcmask 523264   ;;  %v1837_v15 = vld [vmem:[#allocation6] sm:$0xff]   ;;  %vm1210_vm2 = vcmask 1043456   ;;  %vm1378_vm3 = vcmask 1040384  }
  0x85   : > { %1727 = vmatprep.subr.bf16.mxu1 %v2029_v0  ;;  %1735 = vmatprep.mubr.msk.bf16.mxu1 %vm2030_vm0, %v2029_v0  ;;  %v355_v5 = vld [vmem:[%s307_s20] sm:$0xf]  ;;  %v1838_v16 = vld [vmem:[#allocation6 + $0x8] sm:$0xff]   ;;  %v1839_v17 = vld [vmem:[#allocation6 + $0x10] sm:$0xff]   ;;  %vm1379_vm4 = vsmask.f32 256 }
  0x86   : > { %1716 = vmatpush3.bf16.msra.mxu0 %v1833_v1  ;;  %v1627_v6 = vld [vmem:[%s2413_s2] ss:$0 sm:$0xff]  ;;  %1728 = vmatpush3.bf16.msra.mxu1 %v1837_v15  ;;  %v555_v31 = vld [vmem:[#allocation7] sm:$0xff]  ;;  %v556_v33 = vld [vmem:[#allocation7 + $0x8] sm:$0xff]  ;;  %vm1381_vm5 = vcmask 1041409   ;;  %vm1385_vm7 = vcmask 1042434  }
  0x87   : > { %1717 = vmatprep.subr.bf16.mxu0 %v2029_v0  ;;  %1729 = vmatprep.subr.bf16.mxu1 %v2029_v0  ;;  %v1840_v18 = vld [vmem:[#allocation6 + $0x18] sm:$0xff]   ;;  %v559_v32 = vld [vmem:[#allocation7 + $0x20] sm:$0xff]  ;;  %v560_v36 = vld [vmem:[#allocation7 + $0x28] sm:$0xff]  ;;  %vm1382_vm6 = vsmask.f32 1280  ;;  %vm1389_vm9 = vcmask 1043459  }
  0x88   : > { %v1639_v34 = vcombine.low %v555_v31, %v559_v32  ;;  %v1640_v35 = vcombine.high %v555_v31, %v559_v32  ;;  %v563_v37 = vld [vmem:[#allocation7 + $0x40] sm:$0xff]  ;;  %v1641_v39 = vcombine.low %v556_v33, %v560_v36  ;;  %v1642_v40 = vcombine.high %v556_v33, %v560_v36  ;;  %v564_v42 = vld [vmem:[#allocation7 + $0x48] sm:$0xff]  ;;  %v1633_v47 = vld [vmem:[%s2415_s4] ss:$0 sm:$0xff]  ;;  %p349_p7 = scmp.lt.s32.totalorder %s2011_s27, 1  ;;  %s2445_s19 = sld [smem:[#allocation12_spill]] }
  0x89   : > { %v567_v38 = vld [vmem:[#allocation7 + $0x60] sm:$0xff]  ;;  %v568_v43 = vld [vmem:[#allocation7 + $0x68] sm:$0xff]  ;;  %v2031_v32 = vmov 0   ;;  %v557_v33 = vld [vmem:[#allocation7 + $0x10] sm:$0xff]  ;;  %vm1386_vm8 = vsmask.f32 2304 }
  0x8a   : > { %1718 = vmatpush3.bf16.msra.mxu0 %v1834_v2  ;;  %1730 = vmatpush3.bf16.msra.mxu1 %v1838_v16  ;;  %v1648_v41 = vcombine.high %v563_v37, %v567_v38  ;;  %v1650_v44 = vcombine.high %v564_v42, %v568_v43  ;;  %v1647_v45 = vcombine.low %v563_v37, %v567_v38  ;;  %v571_v54 = vld [vmem:[#allocation7 + $0x80] sm:$0xff]  ;;  %v572_v56 = vld [vmem:[#allocation7 + $0x88] sm:$0xff]  ;;  %v562_v38 = vld [vmem:[#allocation7 + $0x38] sm:$0xff]  ;;  %vm1390_vm10 = vsmask.f32 3328  ;;  %s2454_s27 = smov (!%p349_p7, %s2011_s27), 1 }
  0x8b   : > { %1719 = vmatprep.subr.bf16.mxu0 %v2029_v0  ;;  %1731 = vmatprep.subr.bf16.mxu1 %v2029_v0  ;;  %v1649_v46 = vcombine.low %v564_v42, %v568_v43  ;;  %v575_v55 = vld [vmem:[#allocation7 + $0xa0] sm:$0xff]  ;;  %v576_v58 = vld [vmem:[#allocation7 + $0xa8] sm:$0xff]  ;;  %vm2339_vm11 = vmand %vm1378_vm3, %vm1379_vm4  ;;  %s1626_s14 = sshll.u32 %s2454_s27, 3 }
  0x8c   : > { %v1656_v57 = vcombine.high %v571_v54, %v575_v55  ;;  %v1655_v59 = vcombine.low %v571_v54, %v575_v55  ;;  %v1657_v60 = vcombine.low %v572_v56, %v576_v58  ;;  %v1658_v61 = vcombine.high %v572_v56, %v576_v58  ;;  %v579_v62 = vld [vmem:[#allocation7 + $0xc0] sm:$0xff]  ;;  %v584_v2 = vld [vmem:[#allocation7 + $0xe8] sm:$0xff]  ;;  %v565_v58 = vld [vmem:[#allocation7 + $0x50] sm:$0xff] }
  0x8d   : > { %v583_v63 = vld [vmem:[#allocation7 + $0xe0] sm:$0xff]  ;;  %v596_v16 = vld [vmem:[#allocation7 + $0x148] sm:$0xff]  ;;  %vm2345_vm12 = vmand %vm1381_vm5, %vm1382_vm6  ;;  %vm1397_vm5 = vcmask 1045509   ;;  %vm1398_vm6 = vsmask.f32 5376 }
  0x8e   : > { %1720 = vmatpush3.bf16.msra.mxu0 %v1835_v3  ;;  %1732 = vmatpush3.bf16.msra.mxu1 %v1839_v17  ;;  %v1664_v1 = vcombine.high %v579_v62, %v583_v63  ;;  %v1663_v3 = vcombine.low %v579_v62, %v583_v63  ;;  %v599_v15 = vld [vmem:[#allocation7 + $0x160] sm:$0xff]  ;;  %v616_v31 = vld [vmem:[#allocation7 + $0x1e8] sm:$0xff]  ;;  %vm1384_vm13 = vmor %vm2345_vm12, %vm2339_vm11  ;;  %s352_s22 = scalar_lea.vmem %s2445_s19, %s1626_s14 }
  0x8f   : > { %1721 = vmatprep.subr.bf16.mxu0 %v2029_v0  ;;  %1733 = vmatprep.subr.bf16.mxu1 %v2029_v0  ;;  %v580_v0 = vld [vmem:[#allocation7 + $0xc8] sm:$0xff]  ;;  %vm1387_vm14 = vmand %vm1385_vm7, %vm1386_vm8 }
  0x90   : > { %vm2361_vm15 = vmor %vm1387_vm14, %vm1384_vm13  ;;  %vm1405_vm13 = vcmask 1047559   ;;  %vm1406_vm14 = vsmask.f32 7424 }
  0x91   : > { %vm2367_vm0 = vmand %vm1389_vm9, %vm1390_vm10  ;;  %vm1401_vm9 = vcmask 1046534   ;;  %vm1402_vm10 = vsmask.f32 6400 }
  0x92   : > { %1722 = vmatpush3.bf16.msra.mxu0 %v1836_v4  ;;  %1734 = vmatpush3.bf16.msra.mxu1 %v1840_v18  ;;  %v1665_v4 = vcombine.low %v580_v0, %v584_v2  ;;  %vm1392_vm3 = vmor %vm2367_vm0, %vm2361_vm15 }
  0x93   : > { %981 = vmatprep.subr.bf16.mxu0 %v1640_v35  ;;  %1022 = vmatprep.subr.bf16.mxu1 %v1642_v40  ;;  %v558_v35 = vld [vmem:[#allocation7 + $0x18] sm:$0xff]  ;;  %vm2381_vm8 = vmand %vm1397_vm5, %vm1398_vm6 }
  0x94   : > { %vm1403_vm12 = vmand %vm1401_vm9, %vm1402_vm10 }
  0x95   : > { %1724 = vmatmul.mubr.msk.bf16.vlgmr.msra.gmra.mrb[0].mxu0 %vm395_vm1, %v355_v5  ;;  %v1666_v5 = vcombine.high %v580_v0, %v584_v2  ;;  %v573_v2 = vld [vmem:[#allocation7 + $0x90] sm:$0xff]  ;;  %vm1407_vm0 = vmand %vm1405_vm13, %vm1406_vm14 }
  0x96   : > { %982 = vmatpush1.bf16.msra.mxu0 %v1639_v34  ;;  %1013 = vmatprep.mubr.bf16.mxu0 %v2031_v32  ;;  %v561_v34 = vld [vmem:[#allocation7 + $0x30] sm:$0xff] }
  0x97   : > { %983 = vmatprep.subr.bf16.mxu0 %v1648_v41  ;;  %v1643_v37 = vcombine.low %v557_v33, %v561_v34  ;;  %v1645_v41 = vcombine.low %v558_v35, %v562_v38 }
  0x9a   : > { %984 = vmatpush1.bf16.msra.mxu0 %v1647_v45  ;;  %v1644_v45 = vcombine.high %v557_v33, %v561_v34  ;;  %v605_v33 = vld [vmem:[#allocation7 + $0x190] sm:$0xff] }
  0x9b   : > { %985 = vmatprep.subr.bf16.mxu0 %v1656_v57  ;;  %v609_v34 = vld [vmem:[#allocation7 + $0x1b0] sm:$0xff] }
  0x9e   : > { %986 = vmatpush1.bf16.msra.mxu0 %v1655_v59  ;;  %v569_v59 = vld [vmem:[#allocation7 + $0x70] sm:$0xff] }
  0x9f   : > { %987 = vmatprep.subr.bf16.mxu0 %v1664_v1  ;;  %v1652_v0 = vcombine.high %v565_v58, %v569_v59 }
  0xa2   : > { %988 = vmatpush1.bf16.msra.mxu0 %v1663_v3  ;;  %v577_v3 = vld [vmem:[#allocation7 + $0xb0] sm:$0xff] }
 0x168   : > { %v433_v7 = vpop.f32.mrb[0].mxu0 }
 0x169   : > { %v434_v8 = vadd.f32 %v1627_v6, %v433_v7  ;;  %v1725_v9 = vpop.f32.mrb[1].mxu0  ;;  %v587_v6 = vld [vmem:[#allocation7 + $0x100] sm:$0xff] }
 0x16a   : > { %v436_v10 = vpop.f32.mrb[2].mxu0  ;;  %v591_v7 = vld [vmem:[#allocation7 + $0x120] sm:$0xff] }
 0x16b   : > { %v1726_v11 = vpop.f32.mrb[3].mxu0  ;;  %v439_v12 = vsel %vm395_vm1, %v434_v8, 0.0  ;;  %v444_v13 = vmul.f32 %v434_v8, %v434_v8  ;;  %v1672_v9 = vcombine.high %v587_v6, %v591_v7  ;;  %v592_v10 = vld [vmem:[#allocation7 + $0x128] sm:$0xff] }
 0x16c   : > { %440 = vadd.xlane.f32.xlu0 %v439_v12  ;;  %v1671_v11 = vcombine.low %v587_v6, %v591_v7  ;;  %v1660_v7 = vcombine.high %v573_v2, %v577_v3 }
 0x16d   : > { %v445_v14 = vsel %vm395_vm1, %v444_v13, 0.0  ;;  %989 = vmatprep.subr.bf16.mxu0 %v1672_v9  ;;  %v581_v9 = vld [vmem:[#allocation7 + $0xd0] sm:$0xff] }
 0x16e   : > { %990 = vmatpush1.bf16.msra.mxu0 %v1671_v11  ;;  %v582_v11 = vld [vmem:[#allocation7 + $0xd8] sm:$0xff] }
 0x170   : > { %446 = vadd.xlane.f32.xlu0 %v445_v14  ;;  %v595_v14 = vld [vmem:[#allocation7 + $0x140] sm:$0xff] }
 0x171   : > { %v1679_v17 = vcombine.low %v595_v14, %v599_v15  ;;  %v1680_v18 = vcombine.high %v595_v14, %v599_v15 }
 0x173   : > { %991 = vmatprep.subr.bf16.mxu0 %v1680_v18  ;;  %v593_v18 = vld [vmem:[#allocation7 + $0x130] sm:$0xff] }
 0x174   : > { %992 = vmatpush1.bf16.msra.mxu0 %v1679_v17  ;;  %v589_v17 = vld [vmem:[#allocation7 + $0x110] sm:$0xff] }
 0x1f9   : > { %v441_v19 = vpop.xlane.xlu0 %440 }
 0x1fa   : > { %v443_v20 = vmul.f32 0.015625, %v441_v19  ;;  %v600_v19 = vld [vmem:[#allocation7 + $0x168] sm:$0xff] }
 0x1fc   : > { %v449_v22 = vmul.f32 %v443_v20, %v443_v20  ;;  %v453_v26 = vsub.f32 %v434_v8, %v443_v20  ;;  %v588_v8 = vld [vmem:[#allocation7 + $0x108] sm:$0xff]  ;;  %v603_v20 = vld [vmem:[#allocation7 + $0x180] sm:$0xff] }
 0x1fd   : > { %v447_v21 = vpop.xlane.xlu0 %446  ;;  %v1673_v12 = vcombine.low %v588_v8, %v592_v10  ;;  %v1674_v13 = vcombine.high %v588_v8, %v592_v10  ;;  %v585_v10 = vld [vmem:[#allocation7 + $0xf0] sm:$0xff] }
 0x1fe   : > { %v448_v23 = vmul.f32 0.015625, %v447_v21  ;;  %v607_v21 = vld [vmem:[#allocation7 + $0x1a0] sm:$0xff]  ;;  %v1668_v15 = vcombine.high %v581_v9, %v585_v10 }
 0x1ff   : > { %v1687_v36 = vcombine.low %v603_v20, %v607_v21 }
 0x200   : > { %v450_v24 = vsub.f32 %v448_v23, %v449_v22  ;;  %v1681_v22 = vcombine.low %v596_v16, %v600_v19  ;;  %v1682_v23 = vcombine.high %v596_v16, %v600_v19  ;;  %v590_v19 = vld [vmem:[#allocation7 + $0x118] sm:$0xff] }
 0x202   : > { %v451_v25 = vadd.f32 1e-05, %v450_v24  ;;  %v1688_v24 = vcombine.high %v603_v20, %v607_v21  ;;  %v594_v20 = vld [vmem:[#allocation7 + $0x138] sm:$0xff]  ;;  %v1667_v21 = vcombine.low %v581_v9, %v585_v10 }
 0x204   : > { %1841 = vrsqrt.f32 %v451_v25  ;;  %v604_v25 = vld [vmem:[#allocation7 + $0x188] sm:$0xff]  ;;  %993 = vmatprep.subr.bf16.mxu0 %v1688_v24  ;;  %v1678_v24 = vcombine.high %v590_v19, %v594_v20 }
 0x205   : > { %994 = vmatpush1.bf16.msra.mxu0 %v1687_v36  ;;  %v610_v36 = vld [vmem:[#allocation7 + $0x1b8] sm:$0xff] }
 0x20e   : > { %v1842_v27 = vpop.eup %1841 }
 0x20f   : > { %v454_v28 = vmul.f32 %v1842_v27, %v453_v26  ;;  %v608_v26 = vld [vmem:[#allocation7 + $0x1a8] sm:$0xff]  ;;  %v611_v27 = vld [vmem:[#allocation7 + $0x1c0] sm:$0xff] }
 0x211   : > { %v455_v29 = vmax.f32 %v454_v28, 0.0  ;;  %v1690_v28 = vcombine.high %v604_v25, %v608_v26 }
 0x213   : > { %v456_v30 = vpack.c.bf16 %v455_v29, %v455_v29  ;;  %v615_v29 = vld [vmem:[#allocation7 + $0x1e0] sm:$0xff] }
 0x214   : > { %v1696_v40 = vcombine.high %v611_v27, %v615_v29  ;;  %v1695_v43 = vcombine.low %v611_v27, %v615_v29  ;;  %v598_v27 = vld [vmem:[#allocation7 + $0x158] sm:$0xff]  ;;  %v1675_v29 = vcombine.low %v589_v17, %v593_v18 }
 0x215   : > { %1736 = vmatmul.mubr.msk.bf16.vlgmr.msra.gmra.mrb[0].mxu1 %vm395_vm1, %v456_v30  ;;  %v612_v30 = vld [vmem:[#allocation7 + $0x1c8] sm:$0xff]  ;;  %vm1393_vm1 = vcmask 1044484  }
 0x216   : > { %1023 = vmatpush1.bf16.msra.mxu1 %v1641_v39  ;;  %1054 = vmatprep.mubr.bf16.mxu1 %v2031_v32  ;;  %v1689_v39 = vcombine.low %v604_v25, %v608_v26  ;;  %v1698_v42 = vcombine.high %v612_v30, %v616_v31  ;;  %v597_v25 = vld [vmem:[#allocation7 + $0x150] sm:$0xff] }
 0x217   : > { %1024 = vmatprep.subr.bf16.mxu1 %v1650_v44  ;;  %995 = vmatprep.subr.bf16.mxu0 %v1696_v40  ;;  %v1697_v44 = vcombine.low %v612_v30, %v616_v31  ;;  %v601_v26 = vld [vmem:[#allocation7 + $0x170] sm:$0xff]  ;;  %v1677_v30 = vcombine.low %v590_v19, %v594_v20 }
 0x218   : > { %996 = vmatpush1.bf16.msra.mxu0 %v1695_v43  ;;  %v1684_v31 = vcombine.high %v597_v25, %v601_v26  ;;  %v614_v43 = vld [vmem:[#allocation7 + $0x1d8] sm:$0xff] }
 0x219   : > { %1063 = vmatprep.subr.bf16.mxu0 %v1644_v45  ;;  %v1691_v45 = vcombine.low %v605_v33, %v609_v34 }
 0x21a   : > { %1025 = vmatpush1.bf16.msra.mxu1 %v1649_v46  ;;  %v1646_v46 = vcombine.high %v558_v35, %v562_v38  ;;  %v606_v35 = vld [vmem:[#allocation7 + $0x198] sm:$0xff] }
 0x21b   : > { %1026 = vmatprep.subr.bf16.mxu1 %v1658_v61  ;;  %v570_v61 = vld [vmem:[#allocation7 + $0x78] sm:$0xff]  ;;  %v1694_v40 = vcombine.high %v606_v35, %v610_v36 }
 0x21e   : > { %1027 = vmatpush1.bf16.msra.mxu1 %v1657_v60  ;;  %v566_v60 = vld [vmem:[#allocation7 + $0x58] sm:$0xff] }
 0x21f   : > { %1028 = vmatprep.subr.bf16.mxu1 %v1666_v5  ;;  %v1654_v1 = vcombine.high %v566_v60, %v570_v61  ;;  %v578_v5 = vld [vmem:[#allocation7 + $0xb8] sm:$0xff]  ;;  %v1653_v6 = vcombine.low %v566_v60, %v570_v61 }
 0x222   : > { %1029 = vmatpush1.bf16.msra.mxu1 %v1665_v4  ;;  %v574_v4 = vld [vmem:[#allocation7 + $0x98] sm:$0xff] }
 0x223   : > { %1030 = vmatprep.subr.bf16.mxu1 %v1674_v13  ;;  %v1662_v8 = vcombine.high %v574_v4, %v578_v5  ;;  %v1659_v13 = vcombine.low %v573_v2, %v577_v3  ;;  %v1661_v14 = vcombine.low %v574_v4, %v578_v5 }
 0x226   : > { %1031 = vmatpush1.bf16.msra.mxu1 %v1673_v12  ;;  %v586_v12 = vld [vmem:[#allocation7 + $0xf8] sm:$0xff] }
 0x227   : > { %1032 = vmatprep.subr.bf16.mxu1 %v1682_v23  ;;  %v1670_v16 = vcombine.high %v582_v11, %v586_v12  ;;  %v1676_v23 = vcombine.high %v589_v17, %v593_v18 }
 0x22a   : > { %1033 = vmatpush1.bf16.msra.mxu1 %v1681_v22  ;;  %v1669_v22 = vcombine.low %v582_v11, %v586_v12 }
 0x22b   : > { %1034 = vmatprep.subr.bf16.mxu1 %v1690_v28  ;;  %v602_v28 = vld [vmem:[#allocation7 + $0x178] sm:$0xff] }
 0x22c   : > { %v1685_v38 = vcombine.low %v598_v27, %v602_v28 }
 0x22e   : > { %1035 = vmatpush1.bf16.msra.mxu1 %v1689_v39  ;;  %v1692_v39 = vcombine.high %v605_v33, %v609_v34 }
 0x22f   : > { %1036 = vmatprep.subr.bf16.mxu1 %v1698_v42  ;;  %v617_v42 = vld [vmem:[#allocation7 + $0x1f0] sm:$0xff] }
 0x232   : > { %1037 = vmatpush1.bf16.msra.mxu1 %v1697_v44  ;;  %v618_v44 = vld [vmem:[#allocation7 + $0x1f8] sm:$0xff] }
 0x233   : > { %1104 = vmatprep.subr.bf16.mxu1 %v1646_v46  ;;  %v1693_v46 = vcombine.low %v606_v35, %v610_v36 }
 0x2e8   : > { %v533_v48 = vpop.f32.mrb[0].mxu1 }
 0x2e9   : > { %v2280_v49 = vadd.f32 %v1633_v47, %v533_v48  ;;  %v1737_v50 = vpop.f32.mrb[1].mxu1 }
 0x2ea   : > { %v536_v51 = vpop.f32.mrb[2].mxu1 }
 0x2eb   : > { %539 = vadd.xlane.f32.xlu1 %v2280_v49  ;;  %v1738_v52 = vpop.f32.mrb[3].mxu1  ;;  %v543_v53 = vmul.f32 %v2280_v49, %v2280_v49 }
 0x2ef   : > { %544 = vadd.xlane.f32.xlu1 %v543_v53 }
 0x378   : > { %v540_v47 = vpop.xlane.xlu1 %539 }
 0x379   : > { %v542_v48 = vmul.f32 0.0078125, %v540_v47 }
 0x37b   : > { %v547_v51 = vmul.f32 %v542_v48, %v542_v48  ;;  %v551_v55 = vsub.f32 %v2280_v49, %v542_v48  ;;  %v1651_v49 = vcombine.low %v565_v58, %v569_v59  ;;  %v1702_v48 = vcombine.high %v614_v43, %v618_v44 }
 0x37c   : > { %v545_v50 = vpop.xlane.xlu1 %544  ;;  %v621_v58 = vlaneseq }
 0x37d   : > { %v546_v52 = vmul.f32 0.0078125, %v545_v50 }
 0x37e   : > { %v2296_v61 = vshrl.u32 %v621_v58, 7 }
 0x37f   : > { %v548_v53 = vsub.f32 %v546_v52, %v547_v51  ;;  %v1701_v51 = vcombine.low %v614_v43, %v618_v44 }
 0x380   : > { %v631_v3 = vsub.s32 2, %v2296_v61  ;;  %v639_v9 = vsub.s32 4, %v2296_v61  ;;  %v651_v20 = vsub.s32 7, %v2296_v61 }
 0x381   : > { %v549_v54 = vadd.f32 1e-05, %v548_v53 }
 0x383   : > { %1843 = vrsqrt.f32 %v549_v54 }
 0x38d   : > { %v1844_v56 = vpop.eup %1843 }
 0x38e   : > { %v552_v57 = vmul.f32 %v1844_v56, %v551_v55 }
 0x390   : > { %v553_v62 = vmax.f32 %v552_v57, 0.0 }
 0x392   : > { %v2288_v63 = vpack.c.bf16 %v553_v62, %v553_v62  ;;  %v623_v62 = vsub.s32 0, %v2296_v61 }
 0x394   : > { %1014 = vmatmul.mubr.bf16.vlgmr.msra.gmra.mrb[4].mxu0 %v2288_v63  ;;  %1055 = vmatmul.mubr.bf16.vlgmr.msra.gmra.mrb[4].mxu1 %v2288_v63 }
 0x395   : > { %1064 = vmatpush1.bf16.msra.mxu0 %v1643_v37  ;;  %1105 = vmatpush1.bf16.msra.mxu1 %v1645_v41  ;;  %v1683_v37 = vcombine.low %v597_v25, %v601_v26  ;;  %v613_v41 = vld [vmem:[#allocation7 + $0x1d0] sm:$0xff] }
 0x396   : > { %1065 = vmatprep.subr.bf16.mxu0 %v1652_v0  ;;  %1106 = vmatprep.subr.bf16.mxu1 %v1654_v1  ;;  %v1700_v47 = vcombine.high %v613_v41, %v617_v42  ;;  %v1699_v50 = vcombine.low %v613_v41, %v617_v42  ;;  %v627_v0 = vsub.s32 1, %v2296_v61  ;;  %v619_v1 = vld [vmem:[%s2417_s6] sm:$0xff] }
 0x397   : > { %1095 = vmatprep.mubr.bf16.mxu0 %v2031_v32  ;;  %1136 = vmatprep.mubr.bf16.mxu1 %v2031_v32  ;;  %v1686_v32 = vcombine.high %v598_v27, %v602_v28 }
 0x398   : > { %v628_v2 = vrot.slane %v619_v1, %v627_v0 }
 0x399   : > { %1066 = vmatpush1.bf16.msra.mxu0 %v1651_v49  ;;  %1107 = vmatpush1.bf16.msra.mxu1 %v1653_v6  ;;  %v632_v49 = vrot.slane %v619_v1, %v631_v3  ;;  %v635_v6 = vsub.s32 3, %v2296_v61 }
 0x39a   : > { %1067 = vmatprep.subr.bf16.mxu0 %v1660_v7  ;;  %1108 = vmatprep.subr.bf16.mxu1 %v1662_v8 }
 0x39b   : > { %v636_v12 = vrot.slane %v619_v1, %v635_v6 }
 0x39d   : > { %1068 = vmatpush1.bf16.msra.mxu0 %v1659_v13  ;;  %1109 = vmatpush1.bf16.msra.mxu1 %v1661_v14  ;;  %v643_v13 = vsub.s32 5, %v2296_v61 }
 0x39e   : > { %1069 = vmatprep.subr.bf16.mxu0 %v1668_v15  ;;  %1110 = vmatprep.subr.bf16.mxu1 %v1670_v16  ;;  %v647_v15 = vsub.s32 6, %v2296_v61  ;;  %v640_v16 = vrot.slane %v619_v1, %v639_v9 }
 0x3a1   : > { %1070 = vmatpush1.bf16.msra.mxu0 %v1667_v21  ;;  %1111 = vmatpush1.bf16.msra.mxu1 %v1669_v22  ;;  %v644_v21 = vrot.slane %v619_v1, %v643_v13 }
 0x3a2   : > { %1071 = vmatprep.subr.bf16.mxu0 %v1676_v23  ;;  %1112 = vmatprep.subr.bf16.mxu1 %v1678_v24  ;;  %v648_v23 = vrot.slane %v619_v1, %v647_v15 }
 0x3a5   : > { %1072 = vmatpush1.bf16.msra.mxu0 %v1675_v29  ;;  %1113 = vmatpush1.bf16.msra.mxu1 %v1677_v30  ;;  %v652_v30 = vrot.slane %v619_v1, %v651_v20 }
 0x3a6   : > { %1073 = vmatprep.subr.bf16.mxu0 %v1684_v31  ;;  %1114 = vmatprep.subr.bf16.mxu1 %v1686_v32 }
 0x3a9   : > { %1074 = vmatpush1.bf16.msra.mxu0 %v1683_v37  ;;  %1115 = vmatpush1.bf16.msra.mxu1 %v1685_v38 }
 0x3aa   : > { %1075 = vmatprep.subr.bf16.mxu0 %v1692_v39  ;;  %1116 = vmatprep.subr.bf16.mxu1 %v1694_v40 }
 0x3ad   : > { %1076 = vmatpush1.bf16.msra.mxu0 %v1691_v45  ;;  %1117 = vmatpush1.bf16.msra.mxu1 %v1693_v46 }
 0x3ae   : > { %1077 = vmatprep.subr.bf16.mxu0 %v1700_v47  ;;  %1118 = vmatprep.subr.bf16.mxu1 %v1702_v48 }
 0x3b1   : > { %1078 = vmatpush1.bf16.msra.mxu0 %v1699_v50  ;;  %1119 = vmatpush1.bf16.msra.mxu1 %v1701_v51 }
 0x3b4   : > { %1096 = vmatmul.mubr.bf16.vlgmr.msra.gmra.mrb[8].mxu0 %v2288_v63  ;;  %1137 = vmatmul.mubr.bf16.vlgmr.msra.gmra.mrb[8].mxu1 %v2288_v63  ;;  %v624_v63 = vrot.slane %v619_v1, %v623_v62 }
 0x467   : > { %v1015_v52 = vpop.f32.mrb[4].mxu0  ;;  %v1056_v53 = vpop.f32.mrb[4].mxu1 }
 0x468   : > { %v1017_v54 = vpop.f32.mrb[5].mxu0  ;;  %v1058_v55 = vpop.f32.mrb[5].mxu1  ;;  %v2304_v4 = vadd.f32 %v1015_v52, %v624_v63  ;;  %v2314_v10 = vadd.f32 %v1056_v53, %v632_v49 }
 0x469   : > { %v1019_v56 = vpop.f32.mrb[6].mxu0  ;;  %v1060_v57 = vpop.f32.mrb[6].mxu1  ;;  %v2306_v5 = vadd.f32 %v1017_v54, %v628_v2  ;;  %v1059_v18 = vadd.f32 %v1058_v55, %v636_v12 }
 0x46a   : > { %v1020_v59 = vpop.f32.mrb[7].mxu0  ;;  %v1061_v60 = vpop.f32.mrb[7].mxu1  ;;  %v1156_v7 = vmul.f32 %v2304_v4, %v2304_v4  ;;  %v1158_v17 = vmul.f32 %v2314_v10, %v2314_v10 }
 0x46b   : > { %v1157_v8 = vmul.f32 %v2306_v5, %v2306_v5  ;;  %v1145_v11 = vadd.f32 %v2306_v5, %v2304_v4  ;;  %v1159_v27 = vmul.f32 %v1059_v18, %v1059_v18  ;;  %v2032_v60 = vmov 1966171168  }
 0x46c   : > { %v2324_v62 = vunpack.c.l.s4 %v2032_v60 }
 0x46d   : > { %v1164_v14 = vadd.f32 %v1157_v8, %v1156_v7  ;;  %v1146_v19 = vadd.f32 %v1145_v11, %v2314_v10 }
 0x46f   : > { %v1165_v22 = vadd.f32 %v1164_v14, %v1158_v17  ;;  %v1147_v26 = vadd.f32 %v1146_v19, %v1059_v18 }
 0x471   : > { %v1166_v35 = vadd.f32 %v1165_v22, %v1159_v27 }
 0x487   : > { %v1097_v24 = vpop.f32.mrb[8].mxu0  ;;  %v1138_v25 = vpop.f32.mrb[8].mxu1 }
 0x488   : > { %v1098_v28 = vadd.f32 %v1097_v24, %v640_v16  ;;  %v1099_v29 = vpop.f32.mrb[9].mxu0  ;;  %v1140_v31 = vpop.f32.mrb[9].mxu1  ;;  %v1139_v38 = vadd.f32 %v1138_v25, %v648_v23 }
 0x489   : > { %v1100_v32 = vadd.f32 %v1099_v29, %v644_v21  ;;  %v1101_v33 = vpop.f32.mrb[10].mxu0  ;;  %v1142_v34 = vpop.f32.mrb[10].mxu1  ;;  %v1141_v44 = vadd.f32 %v1140_v31, %v652_v30 }
 0x48a   : > { %v1148_v36 = vadd.f32 %v1147_v26, %v1098_v28  ;;  %v1160_v37 = vmul.f32 %v1098_v28, %v1098_v28  ;;  %v1102_v39 = vpop.f32.mrb[11].mxu0  ;;  %v1143_v40 = vpop.f32.mrb[11].mxu1  ;;  %v1162_v45 = vmul.f32 %v1139_v38, %v1139_v38 }
 0x48b   : > { %v1161_v41 = vmul.f32 %v1100_v32, %v1100_v32  ;;  %v1163_v50 = vmul.f32 %v1141_v44, %v1141_v44 }
 0x48c   : > { %v1167_v42 = vadd.f32 %v1166_v35, %v1160_v37  ;;  %v1149_v43 = vadd.f32 %v1148_v36, %v1100_v32 }
 0x48e   : > { %v1150_v46 = vadd.f32 %v1149_v43, %v1139_v38  ;;  %v1168_v47 = vadd.f32 %v1167_v42, %v1161_v41 }
 0x490   : > { %v1151_v48 = vadd.f32 %v1150_v46, %v1141_v44  ;;  %v1169_v51 = vadd.f32 %v1168_v47, %v1162_v45 }
 0x492   : > { %1152 = vadd.xlane.f32.xlu0 %v1151_v48  ;;  %v1170_v52 = vadd.f32 %v1169_v51, %v1163_v50 }
 0x494   : > { %1171 = vadd.xlane.f32.xlu1 %v1170_v52 }
 0x51f   : > { %v1153_v53 = vpop.xlane.xlu0 %1152 }
 0x520   : > { %v1155_v54 = vmul.f32 0.0009765625, %v1153_v53 }
 0x521   : > { %v1172_v55 = vpop.xlane.xlu1 %1171 }
 0x522   : > { %v1173_v56 = vmul.f32 0.0009765625, %v1172_v55  ;;  %v1174_v57 = vmul.f32 %v1155_v54, %v1155_v54  ;;  %v1178_v0 = vsub.f32 %v2304_v4, %v1155_v54  ;;  %v1179_v1 = vsub.f32 %v2306_v5, %v1155_v54 }
 0x523   : > { %v1180_v63 = vsub.f32 %v2314_v10, %v1155_v54  ;;  %v1181_v2 = vsub.f32 %v1059_v18, %v1155_v54  ;;  %v1182_v49 = vsub.f32 %v1098_v28, %v1155_v54  ;;  %v1183_v6 = vsub.f32 %v1100_v32, %v1155_v54 }
 0x524   : > { %v1175_v58 = vsub.f32 %v1173_v56, %v1174_v57  ;;  %v1184_v7 = vsub.f32 %v1139_v38, %v1155_v54  ;;  %v1185_v8 = vsub.f32 %v1141_v44, %v1155_v54 }
 0x526   : > { %v1176_v59 = vadd.f32 1e-05, %v1175_v58 }
 0x528   : > { %1845 = vrsqrt.f32 %v1176_v59 }
 0x532   : > { %v1846_v3 = vpop.eup %1845 }
 0x533   : > { %v1186_v9 = vmul.f32 %v1846_v3, %v1178_v0  ;;  %v1187_v11 = vmul.f32 %v1846_v3, %v1179_v1  ;;  %v1188_v12 = vmul.f32 %v1846_v3, %v1180_v63  ;;  %v1189_v13 = vmul.f32 %v1846_v3, %v1181_v2 }
 0x534   : > { %v1190_v14 = vmul.f32 %v1846_v3, %v1182_v49  ;;  %v1191_v15 = vmul.f32 %v1846_v3, %v1183_v6  ;;  %v1192_v16 = vmul.f32 %v1846_v3, %v1184_v7  ;;  %v1193_v17 = vmul.f32 %v1846_v3, %v1185_v8 }
 0x535   : > { %v1194_v19 = vmax.f32 %v1186_v9, 0.0  ;;  %v1195_v4 = vmax.f32 %v1187_v11, 0.0  ;;  %v1196_v20 = vmax.f32 %v1188_v12, 0.0  ;;  %v1197_v5 = vmax.f32 %v1189_v13, 0.0 }
 0x536   : > { %v1198_v21 = vmax.f32 %v1190_v14, 0.0  ;;  %v1199_v10 = vmax.f32 %v1191_v15, 0.0  ;;  %v1200_v18 = vmax.f32 %v1192_v16, 0.0  ;;  %v1201_v22 = vmax.f32 %v1193_v17, 0.0  ;;  %v1409_v16 = vld [vmem:[%s352_s22] sm:$0xff] }
 0x537   : > { %v1202_v23 = vpack.c.bf16 %v1194_v19, %v1194_v19  ;;  %v1203_v24 = vpack.c.bf16 %v1195_v4, %v1195_v4  ;;  %v1204_v25 = vpack.c.bf16 %v1196_v20, %v1196_v20  ;;  %v1205_v26 = vpack.c.bf16 %v1197_v5, %v1197_v5 }
 0x538   : > { %v1206_v27 = vpack.c.bf16 %v1198_v21, %v1198_v21  ;;  %v1207_v28 = vpack.c.bf16 %v1199_v10, %v1199_v10  ;;  %v1208_v29 = vpack.c.bf16 %v1200_v18, %v1200_v18  ;;  %v1209_v30 = vpack.c.bf16 %v1201_v22, %v1201_v22 }
 0x539   : > { %v1213_v31 = vsel %vm1210_vm2, %v1202_v23, 4286644096  ;;  %v1226_v32 = vsel %vm1210_vm2, %v1203_v24, 4286644096  ;;  %v1239_v33 = vsel %vm1210_vm2, %v1204_v25, 4286644096 }
 0x53a   : > { %v1215_v34 = vunpack.i.l.bf16 %v1213_v31  ;;  %v1216_v35 = vunpack.i.h.bf16 %v1213_v31  ;;  %v1228_v36 = vunpack.i.l.bf16 %v1226_v32  ;;  %v1229_v37 = vunpack.i.h.bf16 %v1226_v32 }
 0x53b   : > { %v1241_v38 = vunpack.i.l.bf16 %v1239_v33  ;;  %v1242_v39 = vunpack.i.h.bf16 %v1239_v33  ;;  %v1252_v40 = vsel %vm1210_vm2, %v1205_v26, 4286644096  ;;  %v1265_v41 = vsel %vm1210_vm2, %v1206_v27, 4286644096 }
 0x53c   : > { %v1217_v42 = vmax.f32 %v1215_v34, %v1216_v35  ;;  %v1230_v43 = vmax.f32 %v1228_v36, %v1229_v37  ;;  %v1254_v44 = vunpack.i.l.bf16 %v1252_v40  ;;  %v1255_v45 = vunpack.i.h.bf16 %v1252_v40 }
 0x53d   : > { %v1243_v46 = vmax.f32 %v1241_v38, %v1242_v39  ;;  %v1267_v47 = vunpack.i.l.bf16 %v1265_v41  ;;  %v1268_v48 = vunpack.i.h.bf16 %v1265_v41  ;;  %v1278_v50 = vsel %vm1210_vm2, %v1207_v28, 4286644096 }
 0x53e   : > { %v1218_v51 = vrot.slane %v1217_v42, 4  ;;  %v1231_v52 = vrot.slane %v1230_v43, 4  ;;  %v1256_v53 = vmax.f32 %v1254_v44, %v1255_v45  ;;  %v1280_v54 = vunpack.i.l.bf16 %v1278_v50 }
 0x53f   : > { %v1244_v55 = vrot.slane %v1243_v46, 4  ;;  %v1269_v56 = vmax.f32 %v1267_v47, %v1268_v48  ;;  %v1281_v57 = vunpack.i.h.bf16 %v1278_v50  ;;  %v1291_v58 = vsel %vm1210_vm2, %v1208_v29, 4286644096 }
 0x540   : > { %v1219_v59 = vmax.f32 %v1217_v42, %v1218_v51  ;;  %v1232_v60 = vmax.f32 %v1230_v43, %v1231_v52  ;;  %v1257_v0 = vrot.slane %v1256_v53, 4  ;;  %v1293_v1 = vunpack.i.l.bf16 %v1291_v58 }
 0x541   : > { %v1245_v63 = vmax.f32 %v1243_v46, %v1244_v55  ;;  %v1270_v2 = vrot.slane %v1269_v56, 4  ;;  %v1282_v3 = vmax.f32 %v1280_v54, %v1281_v57  ;;  %v1294_v49 = vunpack.i.h.bf16 %v1291_v58 }
 0x542   : > { %v1220_v6 = vrot.slane %v1219_v59, 2  ;;  %v1233_v7 = vrot.slane %v1232_v60, 2  ;;  %v1258_v8 = vmax.f32 %v1256_v53, %v1257_v0  ;;  %v1304_v9 = vsel %vm1210_vm2, %v1209_v30, 4286644096 }
 0x543   : > { %v1246_v12 = vrot.slane %v1245_v63, 2  ;;  %v1271_v13 = vmax.f32 %v1269_v56, %v1270_v2  ;;  %v1283_v14 = vrot.slane %v1282_v3, 4  ;;  %v1295_v15 = vmax.f32 %v1293_v1, %v1294_v49 }
 0x544   : > { %v1221_v17 = vmax.f32 %v1219_v59, %v1220_v6  ;;  %v1234_v19 = vmax.f32 %v1232_v60, %v1233_v7  ;;  %v1259_v4 = vrot.slane %v1258_v8, 2  ;;  %v1306_v20 = vunpack.i.l.bf16 %v1304_v9 }
 0x545   : > { %v1247_v5 = vmax.f32 %v1245_v63, %v1246_v12  ;;  %v1272_v21 = vrot.slane %v1271_v13, 2  ;;  %v1284_v10 = vmax.f32 %v1282_v3, %v1283_v14  ;;  %v1296_v18 = vrot.slane %v1295_v15, 4 }
 0x546   : > { %v1222_v22 = vrot.slane %v1221_v17, 1  ;;  %v1235_v23 = vrot.slane %v1234_v19, 1  ;;  %v1260_v24 = vmax.f32 %v1258_v8, %v1259_v4  ;;  %v1307_v25 = vunpack.i.h.bf16 %v1304_v9 }
 0x547   : > { %v1248_v26 = vrot.slane %v1247_v5, 1  ;;  %v1273_v27 = vmax.f32 %v1271_v13, %v1272_v21  ;;  %v1285_v28 = vrot.slane %v1284_v10, 2  ;;  %v1297_v29 = vmax.f32 %v1295_v15, %v1296_v18 }
 0x548   : > { %v1223_v30 = vmax.f32 %v1221_v17, %v1222_v22  ;;  %v1236_v31 = vmax.f32 %v1234_v19, %v1235_v23  ;;  %v1261_v32 = vrot.slane %v1260_v24, 1  ;;  %v1308_v33 = vmax.f32 %v1306_v20, %v1307_v25 }
 0x549   : > { %v1249_v34 = vmax.f32 %v1247_v5, %v1248_v26  ;;  %v1274_v35 = vrot.slane %v1273_v27, 1  ;;  %v1286_v36 = vmax.f32 %v1284_v10, %v1285_v28  ;;  %v1298_v37 = vrot.slane %v1297_v29, 2 }
 0x54a   : > { %v1334_v38 = vunpack.c.0.s8 %v2324_v62  ;;  %v1224_v39 = vpack.i.bf16 %v1223_v30, %v1223_v30  ;;  %v1262_v40 = vmax.f32 %v1260_v24, %v1261_v32  ;;  %v1309_v41 = vrot.slane %v1308_v33, 4 }
 0x54b   : > { %v1237_v43 = vpack.i.bf16 %v1236_v31, %v1236_v31  ;;  %v1275_v44 = vmax.f32 %v1273_v27, %v1274_v35  ;;  %v1287_v45 = vrot.slane %v1286_v36, 1  ;;  %v1299_v46 = vmax.f32 %v1297_v29, %v1298_v37 }
 0x54c   : > { %v1250_v47 = vpack.i.bf16 %v1249_v34, %v1249_v34  ;;  %v1263_v48 = vpack.i.bf16 %v1262_v40, %v1262_v40  ;;  %v1310_v50 = vmax.f32 %v1308_v33, %v1309_v41  ;;  %vm1394_vm2 = vsmask.f32 4352 }
 0x54d   : > { %v1288_v51 = vmax.f32 %v1286_v36, %v1287_v45  ;;  %v1300_v52 = vrot.slane %v1299_v46, 1  ;;  %v1337_v54 = vsub.s32 %v1334_v38, %v2296_v61  ;;  %v1276_v55 = vpack.i.bf16 %v1275_v44, %v1275_v44  ;;  %vm1395_vm4 = vmand %vm1393_vm1, %vm1394_vm2 }
 0x54e   : > { %v1311_v53 = vrot.slane %v1310_v50, 2  ;;  %v1328_v56 = vcombine.low %v1224_v39, %v1237_v43  ;;  %v1329_v60 = vcombine.low %v1250_v47, %v1263_v48  ;;  %vm2377_vm7 = vmor %vm1395_vm4, %vm1392_vm3 }
 0x54f   : > { %v1289_v57 = vpack.i.bf16 %v1288_v51, %v1288_v51  ;;  %v1301_v58 = vmax.f32 %v1299_v46, %v1300_v52  ;;  %vm1400_vm11 = vmor %vm2381_vm8, %vm2377_vm7 }
 0x550   : > { %v1312_v59 = vmax.f32 %v1310_v50, %v1311_v53  ;;  %v1338_v61 = vrot.slane %v1328_v56, %v1337_v54  ;;  %v1345_v6 = vrot.slane %v1329_v60, %v1337_v54  ;;  %vm1404_vm15 = vmor %vm1403_vm12, %vm1400_vm11 }
 0x551   : > { %v1302_v2 = vpack.i.bf16 %v1301_v58, %v1301_v58  ;;  %v1330_v49 = vcombine.low %v1276_v55, %v1289_v57  ;;  %vm1408_vm1 = vmor %vm1407_vm0, %vm1404_vm15 }
 0x552   : > { %v1313_v0 = vrot.slane %v1312_v59, 1  ;;  %v1360_v11 = vcombine.low %v1338_v61, %v1345_v6 }
 0x553   : > { %v1352_v9 = vrot.slane %v1330_v49, %v1337_v54 }
 0x554   : > { %v1314_v3 = vmax.f32 %v1312_v59, %v1313_v0  ;;  %v1368_v14 = vrot.slane %v1360_v11, %v1337_v54 }
 0x556   : > { %v1315_v7 = vpack.i.bf16 %v1314_v3, %v1314_v3 }
 0x558   : > { %v1331_v8 = vcombine.low %v1302_v2, %v1315_v7 }
 0x55a   : > { %v1359_v12 = vrot.slane %v1331_v8, %v1337_v54 }
 0x55c   : > { %v1361_v13 = vcombine.low %v1352_v9, %v1359_v12 }
 0x55e   : > { %v1375_v15 = vrot.slane %v1361_v13, %v1337_v54 }
 0x560   : > { %v1376_v17 = vcombine.low %v1368_v14, %v1375_v15 }
 0x562   : > { %v1410_v19 = vsel %vm1408_vm1, %v1376_v17, %v1409_v16 }
 0x563   : > { %1411 = vst [vmem:[%s352_s22] sm:$0xff] %v1410_v19 }
 0x564 PF: > { %s22_s29 = sadd.s32 1, %s2019_s29   ;;  %s2446_s24 = smov %s2003_s25 }
 0x565   : > { %p19_p4 = scmp.ge.s32.totalorder %s22_s29, 4   ;;  %s2447_s25 = smov %s2007_s26 }
 0x566   : > { %s2448_s26 = smov %s2217_s30  ;;  %s2449_s27 = smov %s2015_s28 }
 0x567   : > { %s2450_s28 = smov %s2452_s7  ;;  %21 = sbr.rel (!%p19_p4) target bundleno = 8 (0x8), region = 108 }
 0x56e   :  { %1528 = vsyncpa [#allocation3], 1 }
 0x56f   :  { %1530 = vsyncpa [#allocation3 + $0x1], 1 }
 0x570   :  { %1531 = vsyncpa [#allocation5], 1 }
 0x571   :  { %1532 = vsyncpa [#allocation8], 1 }

</bundles_post_ra>
